<compile_context>
chip_gen: v7x
topology: tpu7x:2x2x1
jax: 0.10.0
libtpu: 0.0.40
codegen_flags: <defaults>
</compile_context>

<pallas_src>
import functools

import jax
import jax.numpy as jnp
from jax.experimental import pallas as pl
from jax.experimental.pallas import tpu as pltpu


_NEG = -1e30          # finite "minus infinity" for masked / padded logits


def _round_up(x, m):
    return ((x + m - 1) // m) * m


def _vmem_budget():
    """(adjacency-tile budget, vmem_limit_bytes), generation-aware with a safe fallback."""
    cap = 64 << 20                              # conservative (v7x per-TC) fallback
    try:
        c = getattr(pltpu.get_tpu_info(), "vmem_capacity_bytes", None)
        if c:
            cap = int(c)
    except Exception:
        pass
    a_budget = min(48 << 20, max(8 << 20, int(cap * 0.35)))
    vmem_limit = min(100 << 20, max(40 << 20, int(cap * 0.75)))
    return a_budget, vmem_limit


def _pick_tiling(n, itemsize, tile_rows, a_budget):
    """Row tile tm (sublane aligned for the streaming dtype), tight row padding,
    column padding only to lane alignment (128)."""
    row_align = {1: 32, 2: 16}.get(itemsize, 8)
    n_col_pad = _round_up(n, 128)
    if tile_rows is not None:
        tm = _round_up(max(int(tile_rows), row_align), row_align)
    else:
        tm_max = a_budget // max(1, 2 * n_col_pad * itemsize)   # double-buffered A tile
        tm_max = int(min(512, max(row_align, tm_max)))
        tm_max = max(row_align, (tm_max // row_align) * row_align)
        num_tiles = -(-n // tm_max)
        tm = _round_up(-(-n // num_tiles), row_align)
    grid_rows = -(-n // tm)
    n_row_pad = grid_rows * tm
    return tm, grid_rows, n_row_pad, n_col_pad


# ----------------------------------------------------------------------------
# Stage 1: GCNConv (re-associated) + ReLU + the (H1 -> [wl|wr]) contraction.
# ----------------------------------------------------------------------------
def _stage1_kernel(a_ref, u_ref, aux_ref, wg_ref, bg_ref, wlr_ref, pq_ref, *,
                   col_chunk, num_chunks, tile_rows, unroll):
    # a_ref : (TM, NC) int8/bf16/f32 adjacency rows     u_ref : (1, NC) dinv*x (resident)
    # aux   : (TM, 8)  [x, dinv, rsinv, deg, ...]       wg/bg : (1, H1)
    # wlr   : (H1, 128) [col0 = wl, col1 = wr, rest 0]
    def body(c, acc):
        off = pl.multiple_of(c * col_chunk, col_chunk)
        a_c = a_ref[:, pl.ds(off, col_chunk)].astype(jnp.float32)   # upcast A, not the vecs
        u_c = u_ref[:, pl.ds(off, col_chunk)]
        return acc + jnp.sum(a_c * u_c, axis=1, keepdims=True)      # VPU mul + lane reduce

    s = jax.lax.fori_loop(0, num_chunks, body,
                          jnp.zeros((tile_rows, 1), jnp.float32), unroll=unroll)
    x = aux_ref[:, 0:1]
    dinv = aux_ref[:, 1:2]
    # (A_gcn @ x)[rows] = dinv[rows] * (A[rows,:] @ (dinv*x) + dinv[rows]*x[rows])
    gcn = dinv * (s + dinv * x)                                     # (TM, 1)
    a1 = jnp.maximum(gcn * wg_ref[...] + bg_ref[...], 0.0)          # (TM, H1)  ReLU(GCNConv)
    pq_ref[...] = jnp.dot(a1, wlr_ref[...], preferred_element_type=jnp.float32)


# ----------------------------------------------------------------------------
# Stage 2: SAGE mean aggregation (re-associated) + policy MLP -> padded logits,
#          plus per-tile softmax stats (max, sum-exp) for the global softmax.
# ----------------------------------------------------------------------------
def _stage2_kernel(a_ref, p_ref, aux_ref, wp1_ref, bp1_ref, wp2_ref, bp2_ref,
                   logit_ref, stats_ref, *,
                   col_chunk, num_chunks, tile_rows, n_valid, unroll):
    # p_ref : (1, NC) a1.wl for every node (resident, lane-dense)
    # aux   : (TM, 8) [x, dinv, rsinv, deg, q, ...]   wp1 : (3, H2)  bp1: (1,H2) (+bl folded)
    # wp2   : (H2, 128) cols >= n_act zero            bp2 : (1, 128) cols >= n_act = _NEG
    def body(c, acc):
        off = pl.multiple_of(c * col_chunk, col_chunk)
        a_c = a_ref[:, pl.ds(off, col_chunk)].astype(jnp.float32)
        p_c = p_ref[:, pl.ds(off, col_chunk)]
        return acc + jnp.sum(a_c * p_c, axis=1, keepdims=True)

    agg = jax.lax.fori_loop(0, num_chunks, body,
                            jnp.zeros((tile_rows, 1), jnp.float32), unroll=unroll)
    x = aux_ref[:, 0:1]
    rsinv = aux_ref[:, 2:3]
    deg = aux_ref[:, 3:4]
    q = aux_ref[:, 4:5]
    a2 = agg * rsinv + q                                            # (TM,1) SAGEConv (bias folded)
    wp1 = wp1_ref[...]
    h = (a2 * wp1[0:1, :] + deg * wp1[1:2, :] + x * wp1[2:3, :] + bp1_ref[...])
    h = jnp.maximum(h, 0.0)
    logit = jnp.dot(h, wp2_ref[...], preferred_element_type=jnp.float32) + bp2_ref[...]

    rows = pl.program_id(0) * tile_rows + jax.lax.broadcasted_iota(
        jnp.int32, (tile_rows, 1), 0)
    logit = jnp.where(rows < n_valid, logit, _NEG)                  # mask padded rows
    logit_ref[...] = logit

    # per-tile online-softmax stats (lane 0 = tile max, lane 1 = sum exp(logit - max))
    tmax = jnp.max(jnp.max(logit, axis=1, keepdims=True), axis=0, keepdims=True)
    tsum = jnp.sum(jnp.sum(jnp.exp(logit - tmax), axis=1, keepdims=True),
                   axis=0, keepdims=True)
    lane = jax.lax.broadcasted_iota(jnp.int32, (8, 128), 1)
    stats_ref[...] = jnp.where(lane == 0, tmax, jnp.where(lane == 1, tsum, 0.0))


# ----------------------------------------------------------------------------
# Stage 3: single normalize pass (global max / log-sum-exp precombined in wrapper).
# ----------------------------------------------------------------------------
def _normalize_kernel(norm_ref, logit_ref, proba_ref, logp_ref):
    # norm_ref : (2, 128) -- row 0 = global max (all lanes), row 1 = log(sum exp)
    m = norm_ref[0:1, :]
    log_l = norm_ref[1:2, :]
    shifted = logit_ref[...] - m
    logp_ref[...] = shifted - log_l
    proba_ref[...] = jnp.exp(shifted - log_l)


# ----------------------------------------------------------------------------
# Wrapper: graph glue + three pipelined pallas_calls.
# ----------------------------------------------------------------------------
def actor_forward(x, edge_index, params, a_dtype=jnp.int8, tile_rows=None):
    """Actor forward. Returns (proba, log_proba), each of shape (N * action_space,)."""
    (wg, bg, wl, bl, wr, wp1, bp1, wp2, bp2) = params
    f32 = jnp.float32
    N = int(x.shape[0])
    H1 = wg.shape[1]          # 256 (GCN hidden)
    H2 = wp1.shape[1]         # 64  (policy hidden)
    n_act = wp2.shape[1]      # 5   (action space)
    assert n_act <= 128

    a_budget, vmem_limit = _vmem_budget()
    itemsize = jnp.dtype(a_dtype).itemsize
    tm, grid_rows, n_row_pad, n_col_pad = _pick_tiling(N, itemsize, tile_rows, a_budget)
    col_chunk = next(c for c in (512, 256, 128) if n_col_pad % c == 0)
    num_chunks = n_col_pad // col_chunk
    unroll = num_chunks <= 8

    # ---- plain-JAX graph glue ----------------------------------------------------
    src, dst = edge_index[0], edge_index[1]
    x = x.astype(f32).reshape(N)

    # adjacency built directly at padded shape, in the streaming dtype (padded rows/cols
    # stay exactly zero -> padded-node contributions vanish).
    A_pad = jnp.zeros((n_row_pad, n_col_pad), a_dtype).at[dst, src].add(
        jnp.asarray(1, dtype=a_dtype))

    ones_e = jnp.ones(src.shape, f32)
    rowsum = jnp.zeros((N,), f32).at[dst].add(ones_e)     # in-degree  (= A row sums)
    deg_hat = rowsum + 1.0                                # (A + I) row degrees
    dinv = 1.0 / jnp.sqrt(deg_hat)
    rsinv = jnp.where(rowsum > 0, 1.0 / rowsum, 0.0)      # SAGE mean over in-neighbors
    deg_out = jnp.zeros((N,), f32).at[src].add(ones_e)    # degree(edge_index[0], N)

    pad_c = n_col_pad - N
    u_row = jnp.pad(dinv * x, (0, pad_c)).reshape(1, n_col_pad)     # lane-dense resident

    aux = jnp.zeros((n_row_pad, 8), f32)
    aux = (aux.at[:N, 0].set(x).at[:N, 1].set(dinv)
              .at[:N, 2].set(rsinv).at[:N, 3].set(deg_out))

    # ---- packed / folded weights (lane-dense MXU shapes) --------------------------
    wlr = (jnp.zeros((H1, 128), f32)
           .at[:, 0].set(wl.reshape(-1).astype(f32))
           .at[:, 1].set(wr.reshape(-1).astype(f32)))
    bp1_eff = bp1.astype(f32) + bl.astype(f32) * wp1[0:1, :].astype(f32)   # fold SAGE bias
    wp2_pad = jnp.zeros((H2, 128), f32).at[:, :n_act].set(wp2.astype(f32))
    bp2_pad = jnp.full((1, 128), _NEG, f32).at[:, :n_act].set(bp2.astype(f32))

    row_tile = lambda i: (i, 0)
    resident = lambda i: (0, 0)
    cparams = pltpu.CompilerParams(
        dimension_semantics=("parallel",),                # independent row tiles
        vmem_limit_bytes=vmem_limit)

    # ---- stage 1: GCNConv + ReLU + [wl|wr] contraction ----------------------------
    pq = pl.pallas_call(
        functools.partial(_stage1_kernel, col_chunk=col_chunk, num_chunks=num_chunks,
                          tile_rows=tm, unroll=unroll),
        out_shape=jax.ShapeDtypeStruct((n_row_pad, 128), f32),
        grid_spec=pltpu.PrefetchScalarGridSpec(
            num_scalar_prefetch=0,
            grid=(grid_rows,),
            in_specs=[
                pl.BlockSpec((tm, n_col_pad), row_tile),   # A rows (pipelined)
                pl.BlockSpec((1, n_col_pad), resident),    # u = dinv*x (lane-dense resident)
                pl.BlockSpec((tm, 8), row_tile),           # aux slab [x, dinv, ...]
                pl.BlockSpec((1, H1), resident),           # wg
                pl.BlockSpec((1, H1), resident),           # bg
                pl.BlockSpec((H1, 128), resident),         # [wl | wr | 0...]
            ],
            out_specs=pl.BlockSpec((tm, 128), row_tile),
        ),
        compiler_params=cparams,
    )(A_pad, u_row, aux, wg.astype(f32), bg.astype(f32), wlr)

    # p (aggregated by A in stage 2) as a lane-dense resident row; q into the aux slab
    p_row = jnp.pad(pq[:N, 0], (0, pad_c)).reshape(1, n_col_pad)
    aux2 = aux.at[:, 4].set(pq[:, 1])

    # ---- stage 2: SAGE mean aggregation + policy MLP -> logits + per-tile stats ----
    logits, stats = pl.pallas_call(
        functools.partial(_stage2_kernel, col_chunk=col_chunk, num_chunks=num_chunks,
                          tile_rows=tm, n_valid=N, unroll=unroll),
        out_shape=(jax.ShapeDtypeStruct((n_row_pad, 128), f32),
                   jax.ShapeDtypeStruct((8 * grid_rows, 128), f32)),
        grid_spec=pltpu.PrefetchScalarGridSpec(
            num_scalar_prefetch=0,
            grid=(grid_rows,),
            in_specs=[
                pl.BlockSpec((tm, n_col_pad), row_tile),   # A rows (pipelined)
                pl.BlockSpec((1, n_col_pad), resident),    # p (lane-dense resident)
                pl.BlockSpec((tm, 8), row_tile),           # aux slab [x,dinv,rsinv,deg,q]
                pl.BlockSpec((3, H2), resident),           # wp1
                pl.BlockSpec((1, H2), resident),           # bp1 (+ folded bl)
                pl.BlockSpec((H2, 128), resident),         # wp2 (zero-padded)
                pl.BlockSpec((1, 128), resident),          # bp2 (_NEG-padded)
            ],
            out_specs=(pl.BlockSpec((tm, 128), row_tile),
                       pl.BlockSpec((8, 128), row_tile)),
        ),
        compiler_params=cparams,
    )(A_pad, p_row, aux2, wp1.astype(f32), bp1_eff, wp2_pad, bp2_pad)

    # ---- tiny cross-tile softmax combine (plain JAX on grid_rows values) ----------
    tile_stats = stats.reshape(grid_rows, 8, 128)[:, 0, :]
    tmaxs, tsums = tile_stats[:, 0], tile_stats[:, 1]
    m = jnp.max(tmaxs)
    l = jnp.sum(tsums * jnp.exp(tmaxs - m))
    norm_b = jnp.stack([jnp.full((128,), m, f32),
                        jnp.full((128,), jnp.log(l), f32)], axis=0)      # (2, 128)

    # ---- stage 3: single normalize pass (parallel row tiles) ----------------------
    proba_pad, logp_pad = pl.pallas_call(
        _normalize_kernel,
        out_shape=(jax.ShapeDtypeStruct((n_row_pad, 128), f32),
                   jax.ShapeDtypeStruct((n_row_pad, 128), f32)),
        grid_spec=pltpu.PrefetchScalarGridSpec(
            num_scalar_prefetch=0,
            grid=(grid_rows,),
            in_specs=[pl.BlockSpec((2, 128), resident),
                      pl.BlockSpec((tm, 128), row_tile)],
            out_specs=(pl.BlockSpec((tm, 128), row_tile),
                       pl.BlockSpec((tm, 128), row_tile)),
        ),
        compiler_params=cparams,
    )(norm_b, logits)

    proba = proba_pad[:N, :n_act].reshape(-1)
    log_proba = logp_pad[:N, :n_act].reshape(-1)
    return proba, log_proba


# ----------------------------------------------------------------------------
# Pure-JAX reference (matches the PyTorch module semantics).
# ----------------------------------------------------------------------------
def actor_reference(x, edge_index, params):
    (wg, bg, wl, bl, wr, wp1, bp1, wp2, bp2) = params
    N = x.shape[0]
    src, dst = edge_index[0], edge_index[1]
    A = jnp.zeros((N, N), jnp.float32).at[dst, src].add(1.0)
    A_hat = A + jnp.eye(N, dtype=jnp.float32)
    deg_hat = A_hat.sum(axis=1)
    dinv = jnp.where(deg_hat > 0, 1.0 / jnp.sqrt(deg_hat), 0.0)
    A_gcn = dinv[:, None] * A_hat * dinv[None, :]
    rowsum = A.sum(axis=1)
    A_sage = A / jnp.where(rowsum > 0, rowsum, 1.0)[:, None]
    deg_out = jnp.zeros((N,), jnp.float32).at[src].add(1.0).reshape(N, 1)

    z1 = A_gcn @ (x * wg) + bg
    a1 = jnp.maximum(z1, 0.0)
    agg = A_sage @ a1
    a2 = (agg * wl).sum(-1, keepdims=True) + bl + (a1 * wr).sum(-1, keepdims=True)
    feat = jnp.concatenate([a2, deg_out, x], axis=-1)
    h = jnp.maximum(feat @ wp1 + bp1, 0.0)
    logit = (h @ wp2 + bp2).reshape(-1)
    return jax.nn.softmax(logit), jax.nn.log_softmax(logit)


# ----------------------------------------------------------------------------
# Deterministic parameter init (matches the nn module shapes).
# ----------------------------------------------------------------------------
def init_params(key):
    ks = jax.random.split(key, 9)
    s = 0.1
    wg = jax.random.normal(ks[0], (1, 256), jnp.float32) * s    # GCNConv.lin.weight.T
    bg = jax.random.normal(ks[1], (1, 256), jnp.float32) * s    # GCNConv.bias
    wl = jax.random.normal(ks[2], (1, 256), jnp.float32) * s    # SAGEConv.lin_l.weight (out=1)
    bl = jax.random.normal(ks[3], (1, 1), jnp.float32) * s      # SAGEConv.lin_l.bias
    wr = jax.random.normal(ks[4], (1, 256), jnp.float32) * s    # SAGEConv.lin_r.weight (out=1)
    wp1 = jax.random.normal(ks[5], (3, 64), jnp.float32) * s    # policy1.weight.T
    bp1 = jax.random.normal(ks[6], (1, 64), jnp.float32) * s    # policy1.bias
    wp2 = jax.random.normal(ks[7], (64, 5), jnp.float32) * s    # policy2.weight.T
    bp2 = jax.random.normal(ks[8], (1, 5), jnp.float32) * s     # policy2.bias
    return (wg, bg, wl, bl, wr, wp1, bp1, wp2, bp2)


def _make_graph(key, n, skip):
    x = jax.random.normal(key, (n, 1), jnp.float32)
    src = jnp.concatenate([jnp.arange(n), jnp.arange(n)]).astype(jnp.int32)
    dst = jnp.concatenate([(jnp.arange(n) + 1) % n,
                           (jnp.arange(n) + skip) % n]).astype(jnp.int32)
    return x, jnp.stack([src, dst], axis=0)


if __name__ == "__main__":
    key = jax.random.PRNGKey(0)
    k1, k2, k3, kp = jax.random.split(key, 4)
    params = init_params(kp)

    # --- config 1: tiny graph, f32 adjacency, single tile (strict tolerance) -------
    N1 = 8
    x1, ei1 = _make_graph(k1, N1, 3)
    p1, lp1 = actor_forward(x1, ei1, params, a_dtype=jnp.float32)
    jax.block_until_ready((p1, lp1))
    pr1, lpr1 = actor_reference(x1, ei1, params)
    assert p1.shape == (N1 * 5,) and lp1.shape == (N1 * 5,)
    assert jnp.allclose(p1, pr1, atol=1e-5, rtol=1e-4)
    assert jnp.allclose(lp1, lpr1, atol=1e-5, rtol=1e-4)

    # --- config 2: multi-tile f32 (row tiling, padded-row masking, cross-tile
    #     softmax combine), strict tolerance ----------------------------------------
    N2 = 20
    x2, ei2 = _make_graph(k2, N2, 7)
    p2, lp2 = actor_forward(x2, ei2, params, a_dtype=jnp.float32, tile_rows=8)
    jax.block_until_ready((p2, lp2))
    pr2, lpr2 = actor_reference(x2, ei2, params)
    assert p2.shape == (N2 * 5,) and lp2.shape == (N2 * 5,)
    assert jnp.allclose(p2, pr2, atol=1e-5, rtol=1e-4)
    assert jnp.allclose(lp2, lpr2, atol=1e-5, rtol=1e-4)

    # --- config 3: int8-streamed adjacency (default), multi-tile, still exact ------
    N3 = 70
    x3, ei3 = _make_graph(k3, N3, 11)
    p3, lp3 = actor_forward(x3, ei3, params, a_dtype=jnp.int8, tile_rows=32)
    jax.block_until_ready((p3, lp3))
    pr3, lpr3 = actor_reference(x3, ei3, params)
    assert p3.shape == (N3 * 5,) and lp3.shape == (N3 * 5,)
    assert jnp.allclose(p3, pr3, atol=1e-5, rtol=1e-4)
    assert jnp.allclose(lp3, lpr3, atol=1e-5, rtol=1e-4)

    print("KERNEL_OK")
</pallas_src>

<mosaic_0001>
module attributes {stable_mosaic.version = 11 : i64} {
  func.func @_stage1_kernel(%arg0: i32, %arg1: memref<8x128xf32, #tpu.memory_space<vmem>>, %arg2: memref<1x128xf32, #tpu.memory_space<vmem>>, %arg3: memref<8x8xf32, #tpu.memory_space<vmem>>, %arg4: memref<1x256xf32, #tpu.memory_space<vmem>>, %arg5: memref<1x256xf32, #tpu.memory_space<vmem>>, %arg6: memref<256x128xf32, #tpu.memory_space<vmem>>, %arg7: memref<8x128xf32, #tpu.memory_space<vmem>>) attributes {dimension_semantics = [#tpu.dimension_semantics<parallel>], iteration_bounds = array<i64: 1>, scalar_prefetch = 0 : i64, scratch_operands = 0 : i64, tpu.core_type = #tpu.core_type<tc>, window_params = [{transform_indices = @transform_0, window_bounds = array<i64: 8, 128>}, {pipeline_mode = #tpu.pipeline_mode<synchronous>, transform_indices = @transform_1, window_bounds = array<i64: 1, 128>}, {transform_indices = @transform_2, window_bounds = array<i64: 8, 8>}, {pipeline_mode = #tpu.pipeline_mode<synchronous>, transform_indices = @transform_3, window_bounds = array<i64: 1, 256>}, {pipeline_mode = #tpu.pipeline_mode<synchronous>, transform_indices = @transform_4, window_bounds = array<i64: 1, 256>}, {pipeline_mode = #tpu.pipeline_mode<synchronous>, transform_indices = @transform_5, window_bounds = array<i64: 256, 128>}, {transform_indices = @transform_6, window_bounds = array<i64: 8, 128>}]} {
    %cst = arith.constant 0.000000e+00 : f32
    %0 = vector.broadcast %cst : f32 to vector<8x1xf32>
    %c0_i32 = arith.constant 0 : i32
    %c128_i32 = arith.constant 128 : i32
    %1 = arith.muli %c0_i32, %c128_i32 : i32
    %2 = tpu.assume_multiple %1, 128 : i32
    %c0 = arith.constant 0 : index
    %3 = arith.index_cast %2 : i32 to index
    %4 = vector.load %arg1[%c0, %3] : memref<8x128xf32, #tpu.memory_space<vmem>>, vector<8x128xf32>
    %c0_0 = arith.constant 0 : index
    %5 = arith.index_cast %2 : i32 to index
    %6 = vector.load %arg2[%c0_0, %5] : memref<1x128xf32, #tpu.memory_space<vmem>>, vector<1x128xf32>
    %7 = vector.broadcast %6 : vector<1x128xf32> to vector<8x128xf32>
    %8 = arith.mulf %4, %7 : vector<8x128xf32>
    %cst_1 = arith.constant dense<0.000000e+00> : vector<8xf32>
    %9 = vector.multi_reduction <add>, %8, %cst_1 [1] : vector<8x128xf32> to vector<8xf32>
    %10 = vector.shape_cast %9 : vector<8xf32> to vector<8x1xf32>
    %11 = arith.addf %0, %10 : vector<8x1xf32>
    %c1_i32 = arith.constant 1 : i32
    %c0_2 = arith.constant 0 : index
    %c0_3 = arith.constant 0 : index
    %12 = vector.load %arg3[%c0_2, %c0_3] : memref<8x8xf32, #tpu.memory_space<vmem>>, vector<8x1xf32>
    %c0_4 = arith.constant 0 : index
    %c1 = arith.constant 1 : index
    %13 = vector.load %arg3[%c0_4, %c1] : memref<8x8xf32, #tpu.memory_space<vmem>>, vector<8x1xf32>
    %14 = arith.mulf %13, %12 : vector<8x1xf32>
    %15 = arith.addf %11, %14 : vector<8x1xf32>
    %16 = arith.mulf %13, %15 : vector<8x1xf32>
    %c0_5 = arith.constant 0 : index
    %c0_6 = arith.constant 0 : index
    %17 = vector.load %arg4[%c0_5, %c0_6] : memref<1x256xf32, #tpu.memory_space<vmem>>, vector<1x256xf32>
    %18 = vector.broadcast %16 : vector<8x1xf32> to vector<8x256xf32>
    %19 = vector.broadcast %17 : vector<1x256xf32> to vector<8x256xf32>
    %20 = arith.mulf %18, %19 : vector<8x256xf32>
    %c0_7 = arith.constant 0 : index
    %c0_8 = arith.constant 0 : index
    %21 = vector.load %arg5[%c0_7, %c0_8] : memref<1x256xf32, #tpu.memory_space<vmem>>, vector<1x256xf32>
    %22 = vector.broadcast %21 : vector<1x256xf32> to vector<8x256xf32>
    %23 = arith.addf %20, %22 : vector<8x256xf32>
    %cst_9 = arith.constant 0.000000e+00 : f32
    %24 = vector.broadcast %cst_9 : f32 to vector<8x256xf32>
    %25 = arith.maximumf %23, %24 : vector<8x256xf32>
    %c0_10 = arith.constant 0 : index
    %c0_11 = arith.constant 0 : index
    %26 = vector.load %arg6[%c0_10, %c0_11] : memref<256x128xf32, #tpu.memory_space<vmem>>, vector<256x128xf32>
    %cst_12 = arith.constant dense<0.000000e+00> : vector<8x128xf32>
    %27 = tpu.matmul %25, %26, %cst_12 {dimension_numbers = #tpu.dot_dimension_numbers<[1], [0], [0], [1], [0, 0, 1, 1], [], []>} : vector<8x256xf32>, vector<256x128xf32>, vector<8x128xf32> -> vector<8x128xf32>
    %c0_13 = arith.constant 0 : index
    %c0_14 = arith.constant 0 : index
    %28 = vector.load %arg7[%c0_13, %c0_14] : memref<8x128xf32, #tpu.memory_space<vmem>>, vector<8x128xf32>
    tpu.vector_store %arg7[%c0_13, %c0_14], %27 {strides = array<i32>} : memref<8x128xf32, #tpu.memory_space<vmem>>, vector<8x128xf32>,
    return
  }
  func.func @transform_0(%arg0: i32) -> (i32, i32) {
    %c0_i32 = arith.constant 0 : i32
    %c0_i32_0 = arith.constant 0 : i32
    return %arg0, %c0_i32 : i32, i32
  }
  func.func @transform_1(%arg0: i32) -> (i32, i32) {
    %c0_i32 = arith.constant 0 : i32
    %c0_i32_0 = arith.constant 0 : i32
    %c0_i32_1 = arith.constant 0 : i32
    return %c0_i32, %c0_i32_0 : i32, i32
  }
  func.func @transform_2(%arg0: i32) -> (i32, i32) {
    %c0_i32 = arith.constant 0 : i32
    %c0_i32_0 = arith.constant 0 : i32
    return %arg0, %c0_i32 : i32, i32
  }
  func.func @transform_3(%arg0: i32) -> (i32, i32) {
    %c0_i32 = arith.constant 0 : i32
    %c0_i32_0 = arith.constant 0 : i32
    %c0_i32_1 = arith.constant 0 : i32
    return %c0_i32, %c0_i32_0 : i32, i32
  }
  func.func @transform_4(%arg0: i32) -> (i32, i32) {
    %c0_i32 = arith.constant 0 : i32
    %c0_i32_0 = arith.constant 0 : i32
    %c0_i32_1 = arith.constant 0 : i32
    return %c0_i32, %c0_i32_0 : i32, i32
  }
  func.func @transform_5(%arg0: i32) -> (i32, i32) {
    %c0_i32 = arith.constant 0 : i32
    %c0_i32_0 = arith.constant 0 : i32
    %c0_i32_1 = arith.constant 0 : i32
    return %c0_i32, %c0_i32_0 : i32, i32
  }
  func.func @transform_6(%arg0: i32) -> (i32, i32) {
    %c0_i32 = arith.constant 0 : i32
    %c0_i32_0 = arith.constant 0 : i32
    return %arg0, %c0_i32 : i32, i32
  }
}

</mosaic_0001>

<bundles_post_ra>
// kernel: tpu_custom_call.1
= control target key start
LH: loop header
LB: loop body
LE: loop exit
PB: predicated region body
PF: predicated region fallthrough
CT: control target
= control target key end

     0   :  { %11 = vsyncpa [#allocation3], 0  ;;  %s512_s0 = inlined_call_operand.hbm [shape: f32[8,128], index: 0, kind: input, shape index: {}]   ;;  %s513_s1 = inlined_call_operand.vmem [shape: f32[1,128], index: 1, kind: input, shape index: {}]   ;;  %s514_s2 = inlined_call_operand.hbm [shape: f32[8,8], index: 2, kind: input, shape index: {}]   ;;  %s515_s3 = inlined_call_operand.vmem [shape: f32[1,256], index: 3, kind: input, shape index: {}]   ;;  %s516_s4 = inlined_call_operand.vmem [shape: f32[1,256], index: 4, kind: input, shape index: {}]   ;;  %s517_s5 = inlined_call_operand.hbm [shape: f32[256,128], index: 5, kind: input, shape index: {}]   ;;  %s518_s6 = inlined_call_operand.hbm [shape: f32[8,128], index: 6, kind: output, shape index: {}]  }
   0x1   :  { %12 = vsyncpa [#allocation6], 0 }
   0x2   :  { %13 = vsyncpa [#allocation4], 0  ;;  %s407_s21 = smov [#allocation5]   ;;  %s408_s23 = smov [#allocation2]  }
   0x3   :  { %s32_s22 = sshll.u32 %s407_s21, 4  ;;  %s20_s24 = sshll.u32 %s408_s23, 4  ;;  %s33_s22 = int_to_ptr.vmem [resolvable:$true] %s32_s22  ;;  %s21_s24 = int_to_ptr.vmem [resolvable:$true] %s20_s24 }
   0x4   :  { %s313_s27 = scalar_lea.hbm %s514_s2, 128 }
   0x5   :  { %p314_p0 = scmp.ne.s32.totalorder %s514_s2, %s313_s27  ;;  %p317_p1 = scmp.lt.u32.totalorder %s313_s27, %s514_s2 }
   0x7   :  { %p319_p2 = pnand %p317_p1, %p314_p0 }
   0x9   :  { %322 = shalt.err (!%p319_p2)
}
   0xa   :  { %s323_s8 = scalar_lea.vmem %s33_s22, 128  ;;  %p328_p4 = scmp.lt.s32.totalorder %s33_s22, %s33_s22 }
   0xb   :  { %p324_p3 = scmp.ne.s32.totalorder %s33_s22, %s323_s8  ;;  %p329_p5 = scmp.lt.s32.totalorder %s323_s8, %s323_s8 }
   0xd   :  { %p330_p6 = por %p329_p5, %p328_p4 }
   0xf   :  { %p331_p7 = pnand %p330_p6, %p324_p3 }
  0x11   :  { %334 = shalt.err (!%p331_p7)
}
  0x12   :  { %35 = dma.hbm_to_vmem [thread:$0]  %s514_s2, 128, %s33_s22, [#allocation6]  }
  0x13   :  { %s335_s13 = scalar_lea.hbm %s512_s0, 128 }
  0x14   :  { %p336_p8 = scmp.ne.s32.totalorder %s512_s0, %s335_s13  ;;  %p339_p9 = scmp.lt.u32.totalorder %s335_s13, %s512_s0 }
  0x16   :  { %p341_p10 = pnand %p339_p9, %p336_p8 }
  0x18   :  { %344 = shalt.err (!%p341_p10)
}
  0x19   :  { %s345_s18 = scalar_lea.vmem %s21_s24, 128  ;;  %p350_p12 = scmp.lt.s32.totalorder %s21_s24, %s21_s24 }
  0x1a   :  { %p346_p11 = scmp.ne.s32.totalorder %s21_s24, %s345_s18  ;;  %p351_p13 = scmp.lt.s32.totalorder %s345_s18, %s345_s18 }
  0x1c   :  { %p352_p0 = por %p351_p13, %p350_p12 }
  0x1e   :  { %p353_p1 = pnand %p352_p0, %p346_p11 }
  0x20   :  { %356 = shalt.err (!%p353_p1)
}
  0x21   :  { %23 = dma.hbm_to_vmem [thread:$0]  %s512_s0, 128, %s21_s24, [#allocation3]  }
  0x22   :  { %s409_s20 = smov [#allocation7]   ;;  %s357_s25 = scalar_lea.hbm %s517_s5, 4096 }
  0x23   :  { %s45_s21 = sshll.u32 %s409_s20, 4  ;;  %p358_p2 = scmp.ne.s32.totalorder %s517_s5, %s357_s25  ;;  %s46_s21 = int_to_ptr.vmem [resolvable:$true] %s45_s21 }
  0x24   :  { %p361_p3 = scmp.lt.u32.totalorder %s357_s25, %s517_s5 }
  0x26   :  { %p363_p4 = pnand %p361_p3, %p358_p2 }
  0x28   :  { %366 = shalt.err (!%p363_p4)
}
  0x29   :  { %s367_s30 = scalar_lea.vmem %s46_s21, 4096  ;;  %p372_p6 = scmp.lt.s32.totalorder %s46_s21, %s46_s21 }
  0x2a   :  { %p368_p5 = scmp.ne.s32.totalorder %s46_s21, %s367_s30  ;;  %p373_p7 = scmp.lt.s32.totalorder %s367_s30, %s367_s30 }
  0x2c   :  { %p374_p8 = por %p373_p7, %p372_p6 }
  0x2e   :  { %p375_p9 = pnand %p374_p8, %p368_p5 }
  0x30   :  { %378 = shalt.err (!%p375_p9)
}
  0x31   :  { %s410_s0 = smov 128   ;;  %s411_s24 = smov 8  }
  0x32   :  { %51 = dma.hbm_to_vmem [thread:$0]  %s517_s5, 4096, %s46_s21, [#allocation6], %s410_s0, %s410_s0, %s411_s24  }
  0x33   :  { %401 = dma.done.wait [#allocation3], 128  }
  0x34   :  { %402 = vsyncadd [#allocation3], 4294967168 }
  0x35   :  { %403 = dma.done.wait [#allocation6], 4224  }
  0x36   :  { %404 = vsyncadd [#allocation6], 4294963072  ;;  %v61_v0 = vld [vmem:[#allocation2] sm:$0xff]  ;;  %v489_v3 = vld [vmem:[#allocation5] sm:$0xff]  ;;  %v412_v4 = vmov 1   ;;  %s413_s11 = smov 1   ;;  %v88_v58 = vlaneseq }
  0x37   :  { %v235_v1 = vld [vmem:[%s513_s1] ss:$0 sm:$0xff]  ;;  %311 = vset.pattern.permute.xlu1 %v412_v4  ;;  %312 = vset.pattern.permute.xlu0 %v412_v4  ;;  %v132_v5 = vld [vmem:[#allocation7 + $0x80] sm:$0xff]  ;;  %v133_v6 = vld [vmem:[#allocation7 + $0x88] sm:$0xff]  ;;  %s414_s14 = smov [#allocation8]  }
  0x38   :  { %v69_v2 = vmul.f32 %v235_v1, %v61_v0  ;;  %v116_v7 = vld [vmem:[#allocation7] sm:$0xff]  ;;  %v271_v8 = vpack.c.bf16 %v133_v6, %v132_v5  ;;  %v117_v9 = vld [vmem:[#allocation7 + $0x8] sm:$0xff]  ;;  %v134_v10 = vld [vmem:[#allocation7 + $0x90] sm:$0xff]  ;;  %v89_v59 = vshrl.u32 %v88_v58, 7  ;;  %s225_s15 = sshll.u32 %s414_s14, 4  ;;  %s226_s15 = int_to_ptr.vmem [resolvable:$true] %s225_s15 }
  0x39   :  { %v135_v11 = vld [vmem:[#allocation7 + $0x98] sm:$0xff]  ;;  %v273_v12 = vpack.c.bf16 %v117_v9, %v116_v7  ;;  %v118_v14 = vld [vmem:[#allocation7 + $0x10] sm:$0xff]  ;;  %v136_v16 = vld [vmem:[#allocation7 + $0xa0] sm:$0xff]  ;;  %p384_p11 = scmp.lt.s32.totalorder %s226_s15, %s226_s15 }
  0x3a   :  { %70 = vadd.xlane.f32.xlu0 %v69_v2  ;;  %v275_v13 = vpack.c.bf16 %v135_v11, %v134_v10  ;;  %v119_v15 = vld [vmem:[#allocation7 + $0x18] sm:$0xff]  ;;  %272 = vmatprep.subr.bf16.mxu0 %v271_v8  ;;  %v137_v17 = vld [vmem:[#allocation7 + $0xa8] sm:$0xff]  ;;  %v120_v20 = vld [vmem:[#allocation7 + $0x20] sm:$0xff]  ;;  %v90_v60 = vsub.s32 0, %v89_v59  ;;  %v94_v61 = vsub.s32 1, %v89_v59 }
  0x3b   :  { %274 = vmatpush3.bf16.msra.mxu0 %v273_v12  ;;  %v277_v18 = vpack.c.bf16 %v119_v15, %v118_v14  ;;  %v279_v19 = vpack.c.bf16 %v137_v17, %v136_v16  ;;  %v121_v21 = vld [vmem:[#allocation7 + $0x28] sm:$0xff]  ;;  %v138_v22 = vld [vmem:[#allocation7 + $0xb0] sm:$0xff]  ;;  %v139_v23 = vld [vmem:[#allocation7 + $0xb8] sm:$0xff] }
  0x3c   :  { %276 = vmatprep.subr.bf16.mxu0 %v275_v13  ;;  %v281_v24 = vpack.c.bf16 %v121_v21, %v120_v20  ;;  %v283_v25 = vpack.c.bf16 %v139_v23, %v138_v22  ;;  %v122_v26 = vld [vmem:[#allocation7 + $0x30] sm:$0xff]  ;;  %v123_v27 = vld [vmem:[#allocation7 + $0x38] sm:$0xff]  ;;  %v140_v28 = vld [vmem:[#allocation7 + $0xc0] sm:$0xff] }
  0x3d   :  { %v141_v29 = vld [vmem:[#allocation7 + $0xc8] sm:$0xff]  ;;  %v285_v30 = vpack.c.bf16 %v123_v27, %v122_v26  ;;  %v124_v32 = vld [vmem:[#allocation7 + $0x40] sm:$0xff]  ;;  %v142_v34 = vld [vmem:[#allocation7 + $0xd0] sm:$0xff] }
  0x3e   :  { %v287_v31 = vpack.c.bf16 %v141_v29, %v140_v28  ;;  %v125_v33 = vld [vmem:[#allocation7 + $0x48] sm:$0xff]  ;;  %v143_v35 = vld [vmem:[#allocation7 + $0xd8] sm:$0xff]  ;;  %v126_v38 = vld [vmem:[#allocation7 + $0x50] sm:$0xff] }
  0x3f   :  { %278 = vmatpush3.bf16.msra.mxu0 %v277_v18  ;;  %v289_v36 = vpack.c.bf16 %v125_v33, %v124_v32  ;;  %v291_v37 = vpack.c.bf16 %v143_v35, %v142_v34  ;;  %v127_v39 = vld [vmem:[#allocation7 + $0x58] sm:$0xff]  ;;  %v144_v40 = vld [vmem:[#allocation7 + $0xe0] sm:$0xff]  ;;  %v145_v41 = vld [vmem:[#allocation7 + $0xe8] sm:$0xff] }
  0x40   :  { %280 = vmatprep.subr.bf16.mxu0 %v279_v19  ;;  %v293_v42 = vpack.c.bf16 %v127_v39, %v126_v38  ;;  %v295_v43 = vpack.c.bf16 %v145_v41, %v144_v40  ;;  %v128_v48 = vld [vmem:[#allocation7 + $0x60] sm:$0xff]  ;;  %v129_v49 = vld [vmem:[#allocation7 + $0x68] sm:$0xff]  ;;  %v146_v52 = vld [vmem:[#allocation7 + $0xf0] sm:$0xff] }
  0x41   :  { %v297_v51 = vpack.c.bf16 %v129_v49, %v128_v48  ;;  %v147_v53 = vld [vmem:[#allocation7 + $0xf8] sm:$0xff]  ;;  %v130_v55 = vld [vmem:[#allocation7 + $0x70] sm:$0xff] }
  0x42   :  { %v299_v54 = vpack.c.bf16 %v147_v53, %v146_v52  ;;  %v131_v56 = vld [vmem:[#allocation7 + $0x78] sm:$0xff]  ;;  %v81_v62 = vld [vmem:[%s515_s3] sm:$0x3]  ;;  %s379_s3 = scalar_lea.vmem %s226_s15, 128 }
  0x43   :  { %282 = vmatpush3.bf16.msra.mxu0 %v281_v24  ;;  %v301_v57 = vpack.c.bf16 %v131_v56, %v130_v55  ;;  %v100_v63 = vld [vmem:[%s516_s4] sm:$0x3]  ;;  %v91_v0 = vrot.slane %v81_v62, %v90_v60  ;;  %v95_v1 = vrot.slane %v81_v62, %v94_v61  ;;  %p380_p10 = scmp.ne.s32.totalorder %s226_s15, %s379_s3  ;;  %p385_p12 = scmp.lt.s32.totalorder %s379_s3, %s379_s3 }
  0x44   :  { %284 = vmatprep.subr.bf16.mxu0 %v283_v25  ;;  %v105_v2 = vrot.slane %v100_v63, %v90_v60 }
  0x45   :  { %p386_p13 = por %p385_p12, %p384_p11 }
  0x47   :  { %286 = vmatpush3.bf16.msra.mxu0 %v285_v30  ;;  %p387_p0 = pnand %p386_p13, %p380_p10 }
  0x48   :  { %288 = vmatprep.subr.bf16.mxu0 %v287_v31 }
  0x4b   :  { %290 = vmatpush3.bf16.msra.mxu0 %v289_v36 }
  0x4c   :  { %292 = vmatprep.subr.bf16.mxu0 %v291_v37 }
  0x4f   :  { %294 = vmatpush3.bf16.msra.mxu0 %v293_v42 }
  0x50   :  { %75 = vrot.lane.b32.xlu0 %v489_v3, %s413_s11  ;;  %296 = vmatprep.subr.bf16.mxu0 %v295_v43 }
  0x53   :  { %298 = vmatpush3.bf16.msra.mxu0 %v297_v51 }
  0x54   :  { %300 = vmatprep.subr.bf16.mxu0 %v299_v54 }
  0x57   :  { %302 = vmatpush3.bf16.msra.mxu0 %v301_v57 }
  0xc7   :  { %v71_v44 = vpop.xlane.xlu0 %70 }
  0xcb   :  { %v76_v45 = vpop.permute.xlu0 %75 }
  0xcc   :  { %v78_v46 = vmul.f32 %v76_v45, %v489_v3 }
  0xce   :  { %v79_v47 = vadd.f32 %v78_v46, %v71_v44 }
  0xd0   :  { %v80_v50 = vmul.f32 %v79_v47, %v489_v3  ;;  %v109_v3 = vrot.slane %v100_v63, %v94_v61 }
  0xd2   :  { %84 = vperm.xlu1 %311, %v80_v50  }
 0x151   :  { %v85_v4 = vpop.permute.xlu1 %84 }
 0x152   :  { %v98_v5 = vmul.f32 %v91_v0, %v85_v4  ;;  %v99_v6 = vmul.f32 %v95_v1, %v85_v4 }
 0x154   :  { %v112_v7 = vadd.f32 %v105_v2, %v98_v5  ;;  %v113_v8 = vadd.f32 %v109_v3, %v99_v6 }
 0x156   :  { %v114_v9 = vmax.f32 %v112_v7, 0.0  ;;  %v115_v10 = vmax.f32 %v113_v8, 0.0 }
 0x158   :  { %212 = vmatprep.mubr.f32.mxu0 %v115_v10 }
 0x159   :  { %213 = vmatmul.mubr.f32.vlgmr.msra.gmra.mrb[0].mxu0 %v114_v9 }
 0x22c   :  { %v268_v11 = vpop.f32.mrb[0].mxu0 }
 0x22d   :  { %v269_v12 = vpop.f32.mrb[1].mxu0 }
 0x22e   :  { %v270_v13 = vadd.f32 %v269_v12, %v268_v11 }
 0x230   :  { %218 = vst [vmem:[#allocation8] sm:$0xff] %v270_v13 }
 0x231   :  { %390 = shalt.err (!%p387_p0)
}
 0x232   :  { %s391_s17 = scalar_lea.hbm %s518_s6, 128 }
 0x233   :  { %p392_p1 = scmp.ne.s32.totalorder %s518_s6, %s391_s17  ;;  %p395_p2 = scmp.lt.u32.totalorder %s391_s17, %s518_s6 }
 0x235   :  { %p397_p3 = pnand %p395_p2, %p392_p1 }
 0x237   :  { %400 = shalt.err (!%p397_p3)
}
 0x238   :  { %228 = dma.vmem_to_hbm [thread:$0]  %s226_s15, 128, %s518_s6, [#allocation4]  }
 0x239   :  { %405 = dma.done.wait [#allocation4], 128  }
 0x23a   :  { %406 = vsyncadd [#allocation4], 4294967168 }
 0x23b   :  { %232 = vsyncpa [#allocation3], 1 }
 0x23c   :  { %233 = vsyncpa [#allocation6], 1 }
 0x23d   :  { %234 = vsyncpa [#allocation4], 1 }

</bundles_post_ra>
